<compile_context>
chip_gen: v7x
topology: tpu7x:2x2x1
jax: 0.10.0
libtpu: 0.0.40
codegen_flags: <defaults>
</compile_context>

<pallas_src>
import functools

import jax
import jax.numpy as jnp
from jax import lax
from jax.experimental import pallas as pl
from jax.experimental.pallas import tpu as pltpu


def _mha_kernel(x_ref, wqkv_ref, wp_ref, bp_ref, o_ref, *,
                num_heads, head_size, scale):
    # x_ref:    (bb, T, C)       tile of sequences
    # wqkv_ref: (C, 3*H*D)       fused [Wq | Wk | Wv] columns (resident)
    # wp_ref:   (H*D, C)         output projection (resident)
    # bp_ref:   (1, C)           projection bias (resident)
    # o_ref:    (bb, T, C)
    bb, T, C = x_ref.shape
    H, D = num_heads, head_size
    M = bb * T

    x2 = x_ref[...].reshape(M, C)

    # Fused QKV projection: single lane-dense MXU matmul, f32 accumulation.
    qkv = jnp.dot(x2, wqkv_ref[...], preferred_element_type=jnp.float32)  # (M, 3*H*D)

    # Causal (lower-triangular) mask built in-kernel (2-D iota for TPU).
    row = lax.broadcasted_iota(jnp.int32, (T, T), 0)
    col = lax.broadcasted_iota(jnp.int32, (T, T), 1)
    causal = (col <= row)[None, :, :]                                     # (1, T, T)

    acc = jnp.zeros((M, C), jnp.float32)
    for h in range(H):                                                    # static, unrolled
        q = qkv[:, h * D:(h + 1) * D].reshape(bb, T, D)
        k = qkv[:, (H + h) * D:(H + h + 1) * D].reshape(bb, T, D)
        v = qkv[:, (2 * H + h) * D:(2 * H + h + 1) * D].reshape(bb, T, D)

        s = jnp.einsum('btd,bsd->bts', q, k,
                       preferred_element_type=jnp.float32) * scale        # (bb, T, T)
        s = jnp.where(causal, s, float('-inf'))
        p = jnp.exp(s - jnp.max(s, axis=-1, keepdims=True))
        p = p / jnp.sum(p, axis=-1, keepdims=True)
        # TODO(synk): training-mode attention dropout would mask `p` here.

        att_h = jnp.einsum('bts,bsd->btd', p, v,
                           preferred_element_type=jnp.float32)            # (bb, T, D)

        # concat_h(att_h) @ Wp^T  ==  sum_h att_h @ Wp^T[h*D:(h+1)*D, :]
        acc = acc + jnp.dot(att_h.reshape(M, D),
                            wp_ref[h * D:(h + 1) * D, :],
                            preferred_element_type=jnp.float32)

    y = acc + bp_ref[...]                       # bias add in f32
    o_ref[...] = y.reshape(bb, T, C).astype(o_ref.dtype)


def multi_head_attention(x, wq, wk, wv, wp, bp, *, num_heads, head_size, bb=8):
    """Causal multi-head attention, eval mode.

    x  : (B, T, C) f32
    wq/wk/wv : (num_heads, head_size, C)   per-head PyTorch (out, in) weights
    wp : (C, num_heads*head_size)          proj.weight (out, in)
    bp : (C,)                              proj.bias
    """
    B, T, C = x.shape
    H, D = num_heads, head_size
    assert wq.shape == (H, D, C) and wk.shape == (H, D, C) and wv.shape == (H, D, C)
    assert wp.shape == (C, H * D) and bp.shape == (C,)

    # Layout glue outside the kernel: fuse per-head weights into (C, 3*H*D)
    # columns ordered [Q heads | K heads | V heads], head-major then dim.
    def to_cols(w):                                # (H, D, C) -> (C, H*D)
        return jnp.transpose(w, (2, 0, 1)).reshape(C, H * D)

    wqkv = jnp.concatenate([to_cols(wq), to_cols(wk), to_cols(wv)], axis=1)
    wp_t = wp.T                                    # (H*D, C)
    bp2 = bp.reshape(1, C)

    # Batch tiling: pad B up to a multiple of the batch tile instead of asserting.
    bb = max(1, min(bb, B))
    Bp = pl.cdiv(B, bb) * bb
    xp = x if Bp == B else jnp.pad(x, ((0, Bp - B), (0, 0), (0, 0)))

    kernel = functools.partial(_mha_kernel, num_heads=H, head_size=D,
                               scale=float(D) ** -0.5)

    out = pl.pallas_call(
        kernel,
        out_shape=jax.ShapeDtypeStruct((Bp, T, C), x.dtype),
        grid_spec=pltpu.PrefetchScalarGridSpec(
            num_scalar_prefetch=0,
            grid=(Bp // bb,),
            in_specs=[
                pl.BlockSpec((bb, T, C), lambda i: (i, 0, 0)),      # x tile
                pl.BlockSpec((C, 3 * H * D), lambda i: (0, 0)),     # fused QKV weights (resident)
                pl.BlockSpec((H * D, C), lambda i: (0, 0)),         # proj weight (resident)
                pl.BlockSpec((1, C), lambda i: (0, 0)),             # proj bias (resident)
            ],
            out_specs=pl.BlockSpec((bb, T, C), lambda i: (i, 0, 0)),
        ),
        compiler_params=pltpu.CompilerParams(
            dimension_semantics=("parallel",)),
    )(xp, wqkv, wp_t, bp2)

    return out[:B] if Bp != B else out


def _reference(x, wq, wk, wv, wp, bp):
    """Pure-JAX mirror of the PyTorch module (eval mode), highest matmul precision."""
    H, D, C = wq.shape
    T = x.shape[1]
    hi = jax.lax.Precision.HIGHEST
    scale = float(D) ** -0.5
    tril = jnp.tril(jnp.ones((T, T), jnp.float32))
    outs = []
    for h in range(H):
        q = jnp.einsum('btc,dc->btd', x, wq[h], precision=hi)
        k = jnp.einsum('btc,dc->btd', x, wk[h], precision=hi)
        v = jnp.einsum('btc,dc->btd', x, wv[h], precision=hi)
        s = jnp.einsum('btd,bsd->bts', q, k, precision=hi) * scale
        s = jnp.where(tril == 0, float('-inf'), s)
        p = jax.nn.softmax(s, axis=-1)
        outs.append(jnp.einsum('bts,bsd->btd', p, v, precision=hi))
    cat = jnp.concatenate(outs, axis=-1)
    return jnp.einsum('bte,ce->btc', cat, wp, precision=hi) + bp


if __name__ == "__main__":
    # Small shapes consistent with the module: batch=2, block_size=T=8,
    # n_embd=32, num_heads=4, head_size=8 (num_heads * head_size == n_embd).
    B, T, n_embd = 2, 8, 32
    num_heads, head_size = 4, 8
    dropout = 0.1                      # eval mode -> identity in the kernel

    key = jax.random.PRNGKey(0)
    kx, kq, kk, kv, kp, kb = jax.random.split(key, 6)

    # PyTorch-like init: U(-1/sqrt(fan_in), 1/sqrt(fan_in)).
    bound_qkv = 1.0 / (n_embd ** 0.5)
    bound_prj = 1.0 / ((num_heads * head_size) ** 0.5)
    wq = jax.random.uniform(kq, (num_heads, head_size, n_embd), jnp.float32,
                            -bound_qkv, bound_qkv)
    wk = jax.random.uniform(kk, (num_heads, head_size, n_embd), jnp.float32,
                            -bound_qkv, bound_qkv)
    wv = jax.random.uniform(kv, (num_heads, head_size, n_embd), jnp.float32,
                            -bound_qkv, bound_qkv)
    wp = jax.random.uniform(kp, (n_embd, num_heads * head_size), jnp.float32,
                            -bound_prj, bound_prj)
    bp = jax.random.uniform(kb, (n_embd,), jnp.float32, -bound_prj, bound_prj)

    x = jax.random.normal(kx, (B, T, n_embd), jnp.float32)

    out = multi_head_attention(x, wq, wk, wv, wp, bp,
                               num_heads=num_heads, head_size=head_size)
    out = jax.block_until_ready(out)

    ref = _reference(x, wq, wk, wv, wp, bp)
    assert out.shape == (B, T, n_embd)
    assert jnp.allclose(out, ref, atol=1e-3, rtol=1e-3), (
        f"mismatch vs reference: max abs err = {jnp.max(jnp.abs(out - ref))}")

    print("KERNEL_OK")
</pallas_src>

<mosaic_0001>
module attributes {stable_mosaic.version = 11 : i64} {
  func.func @_mha_kernel(%arg0: i32, %arg1: memref<2x8x32xf32, #tpu.memory_space<vmem>>, %arg2: memref<32x96xf32, #tpu.memory_space<vmem>>, %arg3: memref<32x32xf32, #tpu.memory_space<vmem>>, %arg4: memref<1x32xf32, #tpu.memory_space<vmem>>, %arg5: memref<2x8x32xf32, #tpu.memory_space<vmem>>) attributes {dimension_semantics = [#tpu.dimension_semantics<parallel>], iteration_bounds = array<i64: 1>, scalar_prefetch = 0 : i64, scratch_operands = 0 : i64, tpu.core_type = #tpu.core_type<tc>, window_params = [{transform_indices = @transform_0, window_bounds = array<i64: 2, 8, 32>}, {pipeline_mode = #tpu.pipeline_mode<synchronous>, transform_indices = @transform_1, window_bounds = array<i64: 32, 96>}, {pipeline_mode = #tpu.pipeline_mode<synchronous>, transform_indices = @transform_2, window_bounds = array<i64: 32, 32>}, {pipeline_mode = #tpu.pipeline_mode<synchronous>, transform_indices = @transform_3, window_bounds = array<i64: 1, 32>}, {transform_indices = @transform_4, window_bounds = array<i64: 2, 8, 32>}]} {
    %c0 = arith.constant 0 : index
    %c0_0 = arith.constant 0 : index
    %c0_1 = arith.constant 0 : index
    %0 = vector.load %arg1[%c0, %c0_0, %c0_1] : memref<2x8x32xf32, #tpu.memory_space<vmem>>, vector<2x8x32xf32>
    %1 = vector.shape_cast %0 : vector<2x8x32xf32> to vector<16x32xf32>
    %c0_2 = arith.constant 0 : index
    %c0_3 = arith.constant 0 : index
    %2 = vector.load %arg2[%c0_2, %c0_3] : memref<32x96xf32, #tpu.memory_space<vmem>>, vector<32x96xf32>
    %cst = arith.constant dense<0.000000e+00> : vector<16x96xf32>
    %3 = tpu.matmul %1, %2, %cst {dimension_numbers = #tpu.dot_dimension_numbers<[1], [0], [0], [1], [0, 0, 1, 1], [], []>} : vector<16x32xf32>, vector<32x96xf32>, vector<16x96xf32> -> vector<16x96xf32>
    %4 = tpu.iota {dimensions = array<i32: 0>} : vector<8x8xi32>
    %5 = tpu.iota {dimensions = array<i32: 1>} : vector<8x8xi32>
    %6 = arith.cmpi sle, %5, %4 : vector<8x8xi32>
    %7 = vector.shape_cast %6 : vector<8x8xi1> to vector<1x8x8xi1>
    %cst_4 = arith.constant 0.000000e+00 : f32
    %8 = vector.broadcast %cst_4 : f32 to vector<16x32xf32>
    %9 = vector.extract_strided_slice %3 {offsets = [0, 0], sizes = [16, 8], strides = [1, 1]} : vector<16x96xf32> to vector<16x8xf32>
    %10 = vector.shape_cast %9 : vector<16x8xf32> to vector<2x8x8xf32>
    %11 = vector.extract_strided_slice %3 {offsets = [0, 32], sizes = [16, 8], strides = [1, 1]} : vector<16x96xf32> to vector<16x8xf32>
    %12 = vector.shape_cast %11 : vector<16x8xf32> to vector<2x8x8xf32>
    %13 = vector.extract_strided_slice %3 {offsets = [0, 64], sizes = [16, 8], strides = [1, 1]} : vector<16x96xf32> to vector<16x8xf32>
    %14 = vector.shape_cast %13 : vector<16x8xf32> to vector<2x8x8xf32>
    "tpu.trace_start"() <{level = 10 : i32, message = "btd,bsd->bts"}> : () -> ()
    %cst_5 = arith.constant dense<0.000000e+00> : vector<2x8x8xf32>
    %15 = tpu.matmul %10, %12, %cst_5 {dimension_numbers = #tpu.dot_dimension_numbers<[2], [2], [1], [1], [0, 0, 0, 1, 1, 1], [0], [0]>} : vector<2x8x8xf32>, vector<2x8x8xf32>, vector<2x8x8xf32> -> vector<2x8x8xf32>
    "tpu.trace_stop"() : () -> ()
    %cst_6 = arith.constant 0.353553385 : f32
    %16 = vector.broadcast %cst_6 : f32 to vector<2x8x8xf32>
    %17 = arith.mulf %15, %16 : vector<2x8x8xf32>
    %cst_7 = arith.constant 0xFF800000 : f32
    %18 = vector.shape_cast %7 : vector<1x8x8xi1> to vector<1x8x8xi1>
    %19 = vector.broadcast %18 : vector<1x8x8xi1> to vector<2x8x8xi1>
    %20 = vector.broadcast %cst_7 : f32 to vector<2x8x8xf32>
    %21 = arith.select %19, %17, %20 : vector<2x8x8xi1>, vector<2x8x8xf32>
    %cst_8 = arith.constant dense<0xFF800000> : vector<2x8xf32>
    %22 = vector.multi_reduction <maximumf>, %21, %cst_8 [2] : vector<2x8x8xf32> to vector<2x8xf32>
    %23 = vector.shape_cast %22 : vector<2x8xf32> to vector<2x8x1xf32>
    %24 = vector.broadcast %23 : vector<2x8x1xf32> to vector<2x8x8xf32>
    %25 = arith.subf %21, %24 : vector<2x8x8xf32>
    %26 = math.exp %25 : vector<2x8x8xf32>
    %cst_9 = arith.constant dense<0.000000e+00> : vector<2x8xf32>
    %27 = vector.multi_reduction <add>, %26, %cst_9 [2] : vector<2x8x8xf32> to vector<2x8xf32>
    %28 = vector.shape_cast %27 : vector<2x8xf32> to vector<2x8x1xf32>
    %29 = vector.broadcast %28 : vector<2x8x1xf32> to vector<2x8x8xf32>
    %30 = arith.divf %26, %29 : vector<2x8x8xf32>
    "tpu.trace_start"() <{level = 10 : i32, message = "bts,bsd->btd"}> : () -> ()
    %cst_10 = arith.constant dense<0.000000e+00> : vector<2x8x8xf32>
    %31 = tpu.matmul %30, %14, %cst_10 {dimension_numbers = #tpu.dot_dimension_numbers<[2], [1], [1], [2], [0, 0, 0, 1, 1, 2], [0], [0]>} : vector<2x8x8xf32>, vector<2x8x8xf32>, vector<2x8x8xf32> -> vector<2x8x8xf32>
    "tpu.trace_stop"() : () -> ()
    %32 = vector.shape_cast %31 : vector<2x8x8xf32> to vector<16x8xf32>
    %c0_11 = arith.constant 0 : index
    %c0_12 = arith.constant 0 : index
    %33 = vector.load %arg3[%c0_11, %c0_12] : memref<32x32xf32, #tpu.memory_space<vmem>>, vector<8x32xf32>
    %cst_13 = arith.constant dense<0.000000e+00> : vector<16x32xf32>
    %34 = tpu.matmul %32, %33, %cst_13 {dimension_numbers = #tpu.dot_dimension_numbers<[1], [0], [0], [1], [0, 0, 1, 1], [], []>} : vector<16x8xf32>, vector<8x32xf32>, vector<16x32xf32> -> vector<16x32xf32>
    %35 = arith.addf %8, %34 : vector<16x32xf32>
    %36 = vector.extract_strided_slice %3 {offsets = [0, 8], sizes = [16, 8], strides = [1, 1]} : vector<16x96xf32> to vector<16x8xf32>
    %37 = vector.shape_cast %36 : vector<16x8xf32> to vector<2x8x8xf32>
    %38 = vector.extract_strided_slice %3 {offsets = [0, 40], sizes = [16, 8], strides = [1, 1]} : vector<16x96xf32> to vector<16x8xf32>
    %39 = vector.shape_cast %38 : vector<16x8xf32> to vector<2x8x8xf32>
    %40 = vector.extract_strided_slice %3 {offsets = [0, 72], sizes = [16, 8], strides = [1, 1]} : vector<16x96xf32> to vector<16x8xf32>
    %41 = vector.shape_cast %40 : vector<16x8xf32> to vector<2x8x8xf32>
    "tpu.trace_start"() <{level = 10 : i32, message = "btd,bsd->bts"}> : () -> ()
    %cst_14 = arith.constant dense<0.000000e+00> : vector<2x8x8xf32>
    %42 = tpu.matmul %37, %39, %cst_14 {dimension_numbers = #tpu.dot_dimension_numbers<[2], [2], [1], [1], [0, 0, 0, 1, 1, 1], [0], [0]>} : vector<2x8x8xf32>, vector<2x8x8xf32>, vector<2x8x8xf32> -> vector<2x8x8xf32>
    "tpu.trace_stop"() : () -> ()
    %cst_15 = arith.constant 0.353553385 : f32
    %43 = vector.broadcast %cst_15 : f32 to vector<2x8x8xf32>
    %44 = arith.mulf %42, %43 : vector<2x8x8xf32>
    %cst_16 = arith.constant 0xFF800000 : f32
    %45 = vector.shape_cast %7 : vector<1x8x8xi1> to vector<1x8x8xi1>
    %46 = vector.broadcast %45 : vector<1x8x8xi1> to vector<2x8x8xi1>
    %47 = vector.broadcast %cst_16 : f32 to vector<2x8x8xf32>
    %48 = arith.select %46, %44, %47 : vector<2x8x8xi1>, vector<2x8x8xf32>
    %cst_17 = arith.constant dense<0xFF800000> : vector<2x8xf32>
    %49 = vector.multi_reduction <maximumf>, %48, %cst_17 [2] : vector<2x8x8xf32> to vector<2x8xf32>
    %50 = vector.shape_cast %49 : vector<2x8xf32> to vector<2x8x1xf32>
    %51 = vector.broadcast %50 : vector<2x8x1xf32> to vector<2x8x8xf32>
    %52 = arith.subf %48, %51 : vector<2x8x8xf32>
    %53 = math.exp %52 : vector<2x8x8xf32>
    %cst_18 = arith.constant dense<0.000000e+00> : vector<2x8xf32>
    %54 = vector.multi_reduction <add>, %53, %cst_18 [2] : vector<2x8x8xf32> to vector<2x8xf32>
    %55 = vector.shape_cast %54 : vector<2x8xf32> to vector<2x8x1xf32>
    %56 = vector.broadcast %55 : vector<2x8x1xf32> to vector<2x8x8xf32>
    %57 = arith.divf %53, %56 : vector<2x8x8xf32>
    "tpu.trace_start"() <{level = 10 : i32, message = "bts,bsd->btd"}> : () -> ()
    %cst_19 = arith.constant dense<0.000000e+00> : vector<2x8x8xf32>
    %58 = tpu.matmul %57, %41, %cst_19 {dimension_numbers = #tpu.dot_dimension_numbers<[2], [1], [1], [2], [0, 0, 0, 1, 1, 2], [0], [0]>} : vector<2x8x8xf32>, vector<2x8x8xf32>, vector<2x8x8xf32> -> vector<2x8x8xf32>
    "tpu.trace_stop"() : () -> ()
    %59 = vector.shape_cast %58 : vector<2x8x8xf32> to vector<16x8xf32>
    %c8 = arith.constant 8 : index
    %c0_20 = arith.constant 0 : index
    %60 = vector.load %arg3[%c8, %c0_20] : memref<32x32xf32, #tpu.memory_space<vmem>>, vector<8x32xf32>
    %cst_21 = arith.constant dense<0.000000e+00> : vector<16x32xf32>
    %61 = tpu.matmul %59, %60, %cst_21 {dimension_numbers = #tpu.dot_dimension_numbers<[1], [0], [0], [1], [0, 0, 1, 1], [], []>} : vector<16x8xf32>, vector<8x32xf32>, vector<16x32xf32> -> vector<16x32xf32>
    %62 = arith.addf %35, %61 : vector<16x32xf32>
    %63 = vector.extract_strided_slice %3 {offsets = [0, 16], sizes = [16, 8], strides = [1, 1]} : vector<16x96xf32> to vector<16x8xf32>
    %64 = vector.shape_cast %63 : vector<16x8xf32> to vector<2x8x8xf32>
    %65 = vector.extract_strided_slice %3 {offsets = [0, 48], sizes = [16, 8], strides = [1, 1]} : vector<16x96xf32> to vector<16x8xf32>
    %66 = vector.shape_cast %65 : vector<16x8xf32> to vector<2x8x8xf32>
    %67 = vector.extract_strided_slice %3 {offsets = [0, 80], sizes = [16, 8], strides = [1, 1]} : vector<16x96xf32> to vector<16x8xf32>
    %68 = vector.shape_cast %67 : vector<16x8xf32> to vector<2x8x8xf32>
    "tpu.trace_start"() <{level = 10 : i32, message = "btd,bsd->bts"}> : () -> ()
    %cst_22 = arith.constant dense<0.000000e+00> : vector<2x8x8xf32>
    %69 = tpu.matmul %64, %66, %cst_22 {dimension_numbers = #tpu.dot_dimension_numbers<[2], [2], [1], [1], [0, 0, 0, 1, 1, 1], [0], [0]>} : vector<2x8x8xf32>, vector<2x8x8xf32>, vector<2x8x8xf32> -> vector<2x8x8xf32>
    "tpu.trace_stop"() : () -> ()
    %cst_23 = arith.constant 0.353553385 : f32
    %70 = vector.broadcast %cst_23 : f32 to vector<2x8x8xf32>
    %71 = arith.mulf %69, %70 : vector<2x8x8xf32>
    %cst_24 = arith.constant 0xFF800000 : f32
    %72 = vector.shape_cast %7 : vector<1x8x8xi1> to vector<1x8x8xi1>
    %73 = vector.broadcast %72 : vector<1x8x8xi1> to vector<2x8x8xi1>
    %74 = vector.broadcast %cst_24 : f32 to vector<2x8x8xf32>
    %75 = arith.select %73, %71, %74 : vector<2x8x8xi1>, vector<2x8x8xf32>
    %cst_25 = arith.constant dense<0xFF800000> : vector<2x8xf32>
    %76 = vector.multi_reduction <maximumf>, %75, %cst_25 [2] : vector<2x8x8xf32> to vector<2x8xf32>
    %77 = vector.shape_cast %76 : vector<2x8xf32> to vector<2x8x1xf32>
    %78 = vector.broadcast %77 : vector<2x8x1xf32> to vector<2x8x8xf32>
    %79 = arith.subf %75, %78 : vector<2x8x8xf32>
    %80 = math.exp %79 : vector<2x8x8xf32>
    %cst_26 = arith.constant dense<0.000000e+00> : vector<2x8xf32>
    %81 = vector.multi_reduction <add>, %80, %cst_26 [2] : vector<2x8x8xf32> to vector<2x8xf32>
    %82 = vector.shape_cast %81 : vector<2x8xf32> to vector<2x8x1xf32>
    %83 = vector.broadcast %82 : vector<2x8x1xf32> to vector<2x8x8xf32>
    %84 = arith.divf %80, %83 : vector<2x8x8xf32>
    "tpu.trace_start"() <{level = 10 : i32, message = "bts,bsd->btd"}> : () -> ()
    %cst_27 = arith.constant dense<0.000000e+00> : vector<2x8x8xf32>
    %85 = tpu.matmul %84, %68, %cst_27 {dimension_numbers = #tpu.dot_dimension_numbers<[2], [1], [1], [2], [0, 0, 0, 1, 1, 2], [0], [0]>} : vector<2x8x8xf32>, vector<2x8x8xf32>, vector<2x8x8xf32> -> vector<2x8x8xf32>
    "tpu.trace_stop"() : () -> ()
    %86 = vector.shape_cast %85 : vector<2x8x8xf32> to vector<16x8xf32>
    %c16 = arith.constant 16 : index
    %c0_28 = arith.constant 0 : index
    %87 = vector.load %arg3[%c16, %c0_28] : memref<32x32xf32, #tpu.memory_space<vmem>>, vector<8x32xf32>
    %cst_29 = arith.constant dense<0.000000e+00> : vector<16x32xf32>
    %88 = tpu.matmul %86, %87, %cst_29 {dimension_numbers = #tpu.dot_dimension_numbers<[1], [0], [0], [1], [0, 0, 1, 1], [], []>} : vector<16x8xf32>, vector<8x32xf32>, vector<16x32xf32> -> vector<16x32xf32>
    %89 = arith.addf %62, %88 : vector<16x32xf32>
    %90 = vector.extract_strided_slice %3 {offsets = [0, 24], sizes = [16, 8], strides = [1, 1]} : vector<16x96xf32> to vector<16x8xf32>
    %91 = vector.shape_cast %90 : vector<16x8xf32> to vector<2x8x8xf32>
    %92 = vector.extract_strided_slice %3 {offsets = [0, 56], sizes = [16, 8], strides = [1, 1]} : vector<16x96xf32> to vector<16x8xf32>
    %93 = vector.shape_cast %92 : vector<16x8xf32> to vector<2x8x8xf32>
    %94 = vector.extract_strided_slice %3 {offsets = [0, 88], sizes = [16, 8], strides = [1, 1]} : vector<16x96xf32> to vector<16x8xf32>
    %95 = vector.shape_cast %94 : vector<16x8xf32> to vector<2x8x8xf32>
    "tpu.trace_start"() <{level = 10 : i32, message = "btd,bsd->bts"}> : () -> ()
    %cst_30 = arith.constant dense<0.000000e+00> : vector<2x8x8xf32>
    %96 = tpu.matmul %91, %93, %cst_30 {dimension_numbers = #tpu.dot_dimension_numbers<[2], [2], [1], [1], [0, 0, 0, 1, 1, 1], [0], [0]>} : vector<2x8x8xf32>, vector<2x8x8xf32>, vector<2x8x8xf32> -> vector<2x8x8xf32>
    "tpu.trace_stop"() : () -> ()
    %cst_31 = arith.constant 0.353553385 : f32
    %97 = vector.broadcast %cst_31 : f32 to vector<2x8x8xf32>
    %98 = arith.mulf %96, %97 : vector<2x8x8xf32>
    %cst_32 = arith.constant 0xFF800000 : f32
    %99 = vector.shape_cast %7 : vector<1x8x8xi1> to vector<1x8x8xi1>
    %100 = vector.broadcast %99 : vector<1x8x8xi1> to vector<2x8x8xi1>
    %101 = vector.broadcast %cst_32 : f32 to vector<2x8x8xf32>
    %102 = arith.select %100, %98, %101 : vector<2x8x8xi1>, vector<2x8x8xf32>
    %cst_33 = arith.constant dense<0xFF800000> : vector<2x8xf32>
    %103 = vector.multi_reduction <maximumf>, %102, %cst_33 [2] : vector<2x8x8xf32> to vector<2x8xf32>
    %104 = vector.shape_cast %103 : vector<2x8xf32> to vector<2x8x1xf32>
    %105 = vector.broadcast %104 : vector<2x8x1xf32> to vector<2x8x8xf32>
    %106 = arith.subf %102, %105 : vector<2x8x8xf32>
    %107 = math.exp %106 : vector<2x8x8xf32>
    %cst_34 = arith.constant dense<0.000000e+00> : vector<2x8xf32>
    %108 = vector.multi_reduction <add>, %107, %cst_34 [2] : vector<2x8x8xf32> to vector<2x8xf32>
    %109 = vector.shape_cast %108 : vector<2x8xf32> to vector<2x8x1xf32>
    %110 = vector.broadcast %109 : vector<2x8x1xf32> to vector<2x8x8xf32>
    %111 = arith.divf %107, %110 : vector<2x8x8xf32>
    "tpu.trace_start"() <{level = 10 : i32, message = "bts,bsd->btd"}> : () -> ()
    %cst_35 = arith.constant dense<0.000000e+00> : vector<2x8x8xf32>
    %112 = tpu.matmul %111, %95, %cst_35 {dimension_numbers = #tpu.dot_dimension_numbers<[2], [1], [1], [2], [0, 0, 0, 1, 1, 2], [0], [0]>} : vector<2x8x8xf32>, vector<2x8x8xf32>, vector<2x8x8xf32> -> vector<2x8x8xf32>
    "tpu.trace_stop"() : () -> ()
    %113 = vector.shape_cast %112 : vector<2x8x8xf32> to vector<16x8xf32>
    %c24 = arith.constant 24 : index
    %c0_36 = arith.constant 0 : index
    %114 = vector.load %arg3[%c24, %c0_36] : memref<32x32xf32, #tpu.memory_space<vmem>>, vector<8x32xf32>
    %cst_37 = arith.constant dense<0.000000e+00> : vector<16x32xf32>
    %115 = tpu.matmul %113, %114, %cst_37 {dimension_numbers = #tpu.dot_dimension_numbers<[1], [0], [0], [1], [0, 0, 1, 1], [], []>} : vector<16x8xf32>, vector<8x32xf32>, vector<16x32xf32> -> vector<16x32xf32>
    %116 = arith.addf %89, %115 : vector<16x32xf32>
    %c0_38 = arith.constant 0 : index
    %c0_39 = arith.constant 0 : index
    %117 = vector.load %arg4[%c0_38, %c0_39] : memref<1x32xf32, #tpu.memory_space<vmem>>, vector<1x32xf32>
    %118 = vector.broadcast %117 : vector<1x32xf32> to vector<16x32xf32>
    %119 = arith.addf %116, %118 : vector<16x32xf32>
    %120 = vector.shape_cast %119 : vector<16x32xf32> to vector<2x8x32xf32>
    %c0_40 = arith.constant 0 : index
    %c0_41 = arith.constant 0 : index
    %c0_42 = arith.constant 0 : index
    %121 = vector.load %arg5[%c0_40, %c0_41, %c0_42] : memref<2x8x32xf32, #tpu.memory_space<vmem>>, vector<2x8x32xf32>
    tpu.vector_store %arg5[%c0_40, %c0_41, %c0_42], %120 {strides = array<i32>} : memref<2x8x32xf32, #tpu.memory_space<vmem>>, vector<2x8x32xf32>,
    return
  }
  func.func @transform_0(%arg0: i32) -> (i32, i32, i32) {
    %c0_i32 = arith.constant 0 : i32
    %c0_i32_0 = arith.constant 0 : i32
    %c0_i32_1 = arith.constant 0 : i32
    return %arg0, %c0_i32, %c0_i32_0 : i32, i32, i32
  }
  func.func @transform_1(%arg0: i32) -> (i32, i32) {
    %c0_i32 = arith.constant 0 : i32
    %c0_i32_0 = arith.constant 0 : i32
    %c0_i32_1 = arith.constant 0 : i32
    return %c0_i32, %c0_i32_0 : i32, i32
  }
  func.func @transform_2(%arg0: i32) -> (i32, i32) {
    %c0_i32 = arith.constant 0 : i32
    %c0_i32_0 = arith.constant 0 : i32
    %c0_i32_1 = arith.constant 0 : i32
    return %c0_i32, %c0_i32_0 : i32, i32
  }
  func.func @transform_3(%arg0: i32) -> (i32, i32) {
    %c0_i32 = arith.constant 0 : i32
    %c0_i32_0 = arith.constant 0 : i32
    %c0_i32_1 = arith.constant 0 : i32
    return %c0_i32, %c0_i32_0 : i32, i32
  }
  func.func @transform_4(%arg0: i32) -> (i32, i32, i32) {
    %c0_i32 = arith.constant 0 : i32
    %c0_i32_0 = arith.constant 0 : i32
    %c0_i32_1 = arith.constant 0 : i32
    return %arg0, %c0_i32, %c0_i32_0 : i32, i32, i32
  }
}

</mosaic_0001>

<bundles_post_ra>
// kernel: tpu_custom_call.1
= control target key start
LH: loop header
LB: loop body
LE: loop exit
PB: predicated region body
PF: predicated region fallthrough
CT: control target
= control target key end

     0   :  { %9 = vsyncpa [#allocation3], 0  ;;  %s2479_s0 = inlined_call_operand.hbm [shape: f32[2,8,32], index: 0, kind: input, shape index: {}]   ;;  %s2480_s1 = inlined_call_operand.hbm [shape: f32[32,96], index: 1, kind: input, shape index: {}]   ;;  %s2481_s2 = inlined_call_operand.hbm [shape: f32[32,32], index: 2, kind: input, shape index: {}]   ;;  %s2482_s3 = inlined_call_operand.vmem [shape: f32[1,32], index: 3, kind: input, shape index: {}]   ;;  %s2483_s4 = inlined_call_operand.hbm [shape: f32[2,8,32], index: 4, kind: output, shape index: {}]  }
   0x1   :  { %10 = vsyncpa [#allocation6], 0 }
   0x2   :  { %11 = vsyncpa [#allocation4], 0  ;;  %s2205_s15 = smov [#allocation5]   ;;  %s2206_s17 = smov [#allocation2]  }
   0x3   :  { %s29_s16 = sshll.u32 %s2205_s15, 4  ;;  %s17_s18 = sshll.u32 %s2206_s17, 4  ;;  %s30_s16 = int_to_ptr.vmem [resolvable:$true] %s29_s16  ;;  %s2249_s18 = int_to_ptr.vmem [resolvable:$true] %s17_s18 }
   0x4   :  { %s2111_s21 = scalar_lea.hbm %s2480_s1, 512 }
   0x5   :  { %p2112_p0 = scmp.ne.s32.totalorder %s2480_s1, %s2111_s21  ;;  %p2115_p1 = scmp.lt.u32.totalorder %s2111_s21, %s2480_s1 }
   0x7   :  { %p2117_p2 = pnand %p2115_p1, %p2112_p0 }
   0x9   :  { %2120 = shalt.err (!%p2117_p2)
}
   0xa   :  { %s2121_s26 = scalar_lea.vmem %s30_s16, 512  ;;  %p2126_p4 = scmp.lt.s32.totalorder %s30_s16, %s30_s16 }
   0xb   :  { %p2122_p3 = scmp.ne.s32.totalorder %s30_s16, %s2121_s26  ;;  %p2127_p5 = scmp.lt.s32.totalorder %s2121_s26, %s2121_s26 }
   0xd   :  { %p2128_p6 = por %p2127_p5, %p2126_p4 }
   0xf   :  { %p2129_p7 = pnand %p2128_p6, %p2122_p3 }
  0x11   :  { %2132 = shalt.err (!%p2129_p7)
}
  0x12   :  { %s2207_s27 = smov 128   ;;  %s2208_s28 = smov 8  }
  0x13   :  { %35 = dma.hbm_to_vmem [thread:$0]  %s2480_s1, 512, %s30_s16, [#allocation6], %s2207_s27, %s2207_s27, %s2208_s28  }
  0x14   :  { %s2133_s7 = scalar_lea.hbm %s2479_s0, 256 }
  0x15   :  { %p2134_p8 = scmp.ne.s32.totalorder %s2479_s0, %s2133_s7  ;;  %p2137_p9 = scmp.lt.u32.totalorder %s2133_s7, %s2479_s0 }
  0x17   :  { %p2139_p10 = pnand %p2137_p9, %p2134_p8 }
  0x19   :  { %2142 = shalt.err (!%p2139_p10)
}
  0x1a   :  { %s2143_s12 = scalar_lea.vmem %s2249_s18, 256  ;;  %p2148_p12 = scmp.lt.s32.totalorder %s2249_s18, %s2249_s18 }
  0x1b   :  { %p2144_p11 = scmp.ne.s32.totalorder %s2249_s18, %s2143_s12  ;;  %p2149_p13 = scmp.lt.s32.totalorder %s2143_s12, %s2143_s12 }
  0x1d   :  { %p2150_p0 = por %p2149_p13, %p2148_p12 }
  0x1f   :  { %p2151_p1 = pnand %p2150_p0, %p2144_p11 }
  0x21   :  { %2154 = shalt.err (!%p2151_p1)
}
  0x22   :  { %23 = dma.hbm_to_vmem [thread:$0]  %s2479_s0, 256, %s2249_s18, [#allocation3], %s2207_s27, %s2207_s27, %s2208_s28  }
  0x23   :  { %s2209_s14 = smov [#allocation7]   ;;  %s2155_s19 = scalar_lea.hbm %s2481_s2, 512 }
  0x24   :  { %s41_s15 = sshll.u32 %s2209_s14, 4  ;;  %p2156_p2 = scmp.ne.s32.totalorder %s2481_s2, %s2155_s19  ;;  %s42_s15 = int_to_ptr.vmem [resolvable:$true] %s41_s15 }
  0x25   :  { %p2159_p3 = scmp.lt.u32.totalorder %s2155_s19, %s2481_s2 }
  0x27   :  { %p2161_p4 = pnand %p2159_p3, %p2156_p2 }
  0x29   :  { %2164 = shalt.err (!%p2161_p4)
}
  0x2a   :  { %s2165_s24 = scalar_lea.vmem %s42_s15, 512  ;;  %p2170_p6 = scmp.lt.s32.totalorder %s42_s15, %s42_s15 }
  0x2b   :  { %p2166_p5 = scmp.ne.s32.totalorder %s42_s15, %s2165_s24  ;;  %p2171_p7 = scmp.lt.s32.totalorder %s2165_s24, %s2165_s24 }
  0x2d   :  { %p2172_p8 = por %p2171_p7, %p2170_p6 }
  0x2f   :  { %p2173_p9 = pnand %p2172_p8, %p2166_p5 }
  0x31   :  { %2176 = shalt.err (!%p2173_p9)
}
  0x32   :  { %47 = dma.hbm_to_vmem [thread:$0]  %s2481_s2, 512, %s42_s15, [#allocation6], %s2207_s27, %s2207_s27, %s2208_s28  }
  0x33   :  { %2199 = dma.done.wait [#allocation3], 256  }
  0x34   :  { %2200 = vsyncadd [#allocation3], 4294967040 }
  0x35   :  { %2201 = dma.done.wait [#allocation6], 1024  }
  0x36   :  { %2202 = vsyncadd [#allocation6], 4294966272  ;;  %vm65_vm0 = vcmask 261120   ;;  %v61_v0 = vld [vmem:[#allocation5] sm:$0xff]  ;;  %v62_v1 = vld [vmem:[#allocation5 + $0x8] sm:$0xff]  ;;  %v2210_v8 = vmov 0.0   ;;  %v147_v13 = vlaneseq }
  0x37   :  { %v63_v2 = vld [vmem:[#allocation5 + $0x10] sm:$0xff]  ;;  %v2046_v3 = vpack.c.bf16 %v62_v1, %v61_v0  ;;  %v64_v4 = vld [vmem:[#allocation5 + $0x18] sm:$0xff]  ;;  %1946 = vmatprep.subr.mxu1 %v2210_v8  ;;  %vm2211_vm1 = vmmov 0   ;;  %s2212_s2 = smov 96   ;;  %vm155_vm2 = vcmask 64512   ;;  %s2213_s25 = smov 64  }
  0x38   :  { %v59_v5 = vld [vmem:[#allocation2] sm:$0xff]  ;;  %v2050_v6 = vpack.c.bf16 %v64_v4, %v63_v2  ;;  %v60_v7 = vld [vmem:[#allocation2 + $0x8] sm:$0xff]  ;;  %1948 = vmatprep.mubr.msk.f32.mxu1 %vm2211_vm1, %v2210_v8  ;;  %v148_v14 = vshrl.u32 %v147_v13, 7  ;;  %v150_v15 = vand.u32 127, %v147_v13  ;;  %s2214_s26 = smov 88   ;;  %s2215_s29 = smov 120  }
  0x39   :  { %1943 = vmatprep.mubr.msk.f32.mxu0 %vm65_vm0, %v59_v5  ;;  %2047 = vmatprep.subr.bf16.mxu0 %v2046_v3  ;;  %s2216_s30 = smov 56   ;;  %s2217_s5 = smov 112  }
  0x3a   :  { %2049 = vmatpush3.bf16.msra.mxu0 %v2046_v3  ;;  %vm2327_vm3 = vcmp.le.s32.totalorder %v150_v15, %v148_v14  ;;  %s2218_s6 = smov 80   ;;  %s2219_s7 = smov 48  }
  0x3b   :  { %2051 = vmatprep.subr.bf16.mxu0 %v2050_v6  ;;  %s2220_s8 = smov 72   ;;  %s2221_s9 = smov 104  }
  0x3c   :  { %s2222_s10 = smov 40   ;;  %s2223_s1 = smov [#allocation8]  }
  0x3d   :  { %s1837_s13 = sshll.u32 %s2223_s1, 4  ;;  %s1838_s13 = int_to_ptr.vmem [resolvable:$true] %s1837_s13 }
  0x3e   :  { %2053 = vmatpush3.bf16.msra.mxu0 %v2050_v6  ;;  %s2177_s14 = scalar_lea.vmem %s1838_s13, 256  ;;  %p2182_p11 = scmp.lt.s32.totalorder %s1838_s13, %s1838_s13 }
  0x3f   :  { %1966 = vmatprep.subr.mxu0 %v2210_v8  ;;  %p2178_p10 = scmp.ne.s32.totalorder %s1838_s13, %s2177_s14  ;;  %p2183_p12 = scmp.lt.s32.totalorder %s2177_s14, %s2177_s14 }
  0x41   :  { %1944 = vmatmul.mubr.msk.f32.vlgmr.msra.gmra.mrb[0].mxu0 %vm65_vm0, %v60_v7  ;;  %p2184_p13 = por %p2183_p12, %p2182_p11 }
  0x42   :  { %1968 = vmatprep.mubr.msk.f32.mxu0 %vm2211_vm1, %v2210_v8 }
  0x43   :  { %p2185_p0 = pnand %p2184_p13, %p2178_p10 }
 0x114   :  { %v2309_v9 = vpop.f32.mrb[0].mxu0 }
 0x115   :  { %v2311_v10 = vpop.f32.mrb[1].mxu0 }
 0x116   :  { %153 = vrot.lane.b32.xlu0 %v2311_v10, %s2212_s2 }
 0x11a   :  { %231 = vrot.lane.b32.xlu0 %v2309_v9, %s2212_s2 }
 0x188   :  { %v154_v11 = vpop.permute.xlu0 %153 }
 0x189   :  { %1947 = vmatpush3.xpose.msk.msra.mxu1 %vm155_vm2, %v154_v11 }
 0x18a   :  { %1951 = vmatprep.subr.mxu1 %v2210_v8 }
 0x18c   :  { %1949 = vmatmul.mubr.msk.f32.vlgmr.msra.gmra.mrb[0].mxu1 %vm155_vm2, %v2311_v10  ;;  %v232_v12 = vpop.permute.xlu0 %231 }
 0x18d   :  { %1952 = vmatpush3.xpose.msk.msra.mxu1 %vm155_vm2, %v232_v12  ;;  %1953 = vmatprep.mubr.msk.f32.mxu1 %vm2211_vm1, %v2210_v8 }
 0x18e   :  { %1956 = vmatprep.subr.mxu1 %v2210_v8 }
 0x190   :  { %1954 = vmatmul.mubr.msk.f32.vlgmr.msra.gmra.mrb[2].mxu1 %vm155_vm2, %v2309_v9 }
 0x191   :  { %1958 = vmatprep.mubr.msk.f32.mxu1 %vm2211_vm1, %v2210_v8 }
 0x25f   :  { %v226_v16 = vpop.f32.mrb[0].mxu1 }
 0x260   :  { %v307_v18 = vmul.f32 0.35355338, %v226_v16  ;;  %v1950_v19 = vpop.f32.mrb[1].mxu1 }
 0x262   :  { %v311_v20 = vsel %vm2327_vm3, %v307_v18, -inf }
 0x263   :  { %v303_v21 = vpop.f32.mrb[2].mxu1  ;;  %v313_v22 = vsel %vm155_vm2, %v311_v20, -inf }
 0x264   :  { %v308_v23 = vmul.f32 0.35355338, %v303_v21  ;;  %314 = vmax.xlane.f32.xlu1 %v313_v22  ;;  %v1955_v24 = vpop.f32.mrb[3].mxu1 }
 0x266   :  { %v312_v25 = vsel %vm2327_vm3, %v308_v23, -inf }
 0x267   :  { %v316_v26 = vsel %vm155_vm2, %v312_v25, -inf }
 0x268   :  { %317 = vmax.xlane.f32.xlu1 %v316_v26  ;;  %v822_v26 = vld [vmem:[#allocation7 + $0x8] sm:$0xff] }
 0x279   :  { %335 = vrot.lane.b32.xlu1 %v2311_v10, %s2213_s25 }
 0x27d   :  { %411 = vrot.lane.b32.xlu1 %v2309_v9, %s2213_s25 }
 0x281   :  { %568 = vrot.lane.b32.xlu1 %v2309_v9, %s2214_s26 }
 0x2f1   :  { %v315_v27 = vpop.xlane.xlu1 %314 }
 0x2f2   :  { %v319_v28 = vsub.f32 %v311_v20, %v315_v27  ;;  %v487_v27 = vld [vmem:[#allocation7] sm:$0xff] }
 0x2f4   :  { %v321_v29 = vmul.f32 1.442695, %v319_v28 }
 0x2f5   :  { %v318_v30 = vpop.xlane.xlu1 %317 }
 0x2f6   :  { %2079 = vpow2.f32 %v321_v29  ;;  %v320_v31 = vsub.f32 %v312_v25, %v318_v30 }
 0x2f8   :  { %v323_v32 = vmul.f32 1.442695, %v320_v31 }
 0x2f9   :  { %v336_v33 = vpop.permute.xlu1 %335 }
 0x2fa   :  { %2081 = vpow2.f32 %v323_v32  ;;  %1957 = vmatpush3.msra.mxu1 %v336_v33 }
 0x2fb   :  { %1961 = vmatprep.subr.mxu1 %v2210_v8 }
 0x2fd   :  { %v412_v38 = vpop.permute.xlu1 %411 }
 0x300   :  { %v2080_v34 = vpop.eup %2079 }
 0x301   :  { %v325_v35 = vsel %vm155_vm2, %v2080_v34, 0.0  ;;  %v569_v39 = vpop.permute.xlu1 %568 }
 0x302   :  { %326 = vadd.xlane.f32.xlu0 %v325_v35 }
 0x304   :  { %v2082_v36 = vpop.eup %2081 }
 0x305   :  { %v328_v37 = vsel %vm155_vm2, %v2082_v36, 0.0 }
 0x306   :  { %329 = vadd.xlane.f32.xlu1 %v328_v37 }
 0x317   :  { %566 = vrot.lane.b32.xlu1 %v2309_v9, %s2215_s29 }
 0x318   :  { %490 = vrot.lane.b32.xlu0 %v2311_v10, %s2214_s26 }
 0x31b   :  { %488 = vrot.lane.b32.xlu1 %v2311_v10, %s2215_s29 }
 0x38f   :  { %v327_v40 = vpop.xlane.xlu0 %326 }
 0x390   :  { %2083 = vrcp.f32 %v327_v40 }
 0x393   :  { %v330_v41 = vpop.xlane.xlu1 %329  ;;  %v491_v42 = vpop.permute.xlu0 %490 }
 0x394   :  { %2085 = vrcp.f32 %v330_v41  ;;  %1967 = vmatpush3.xpose.msk.msra.mxu0 %vm155_vm2, %v491_v42 }
 0x395   :  { %1976 = vmatprep.subr.mxu0 %v2210_v8 }
 0x397   :  { %v567_v43 = vpop.permute.xlu1 %566 }
 0x39a   :  { %v2084_v44 = vpop.eup %2083 }
 0x39b   :  { %v332_v45 = vmul.f32 %v2084_v44, %v2080_v34  ;;  %v489_v46 = vpop.permute.xlu1 %488 }
 0x39c   :  { %1969 = vmatmul.mubr.msk.f32.vlgmr.msra.gmra.mrb[2].mxu0 %vm155_vm2, %v489_v46 }
 0x39d   :  { %1959 = vmatmul.mubr.msk.f32.vlgmr.msra.gmra.mrb[4].mxu1 %vm155_vm2, %v332_v45  ;;  %1978 = vmatprep.mubr.msk.f32.mxu0 %vm2211_vm1, %v2210_v8 }
 0x39e   :  { %v2086_v47 = vpop.eup %2085  ;;  %1962 = vmatpush3.msra.mxu1 %v412_v38  ;;  %1963 = vmatprep.mubr.msk.f32.mxu1 %vm2211_vm1, %v2210_v8 }
 0x39f   :  { %v334_v48 = vmul.f32 %v2086_v47, %v2082_v36  ;;  %1971 = vmatprep.subr.mxu1 %v2210_v8 }
 0x3a1   :  { %1964 = vmatmul.mubr.msk.f32.vlgmr.msra.gmra.mrb[6].mxu1 %vm155_vm2, %v334_v48 }
 0x3a2   :  { %1973 = vmatprep.mubr.msk.f32.mxu1 %vm2211_vm1, %v2210_v8 }
 0x3a5   :  { %1972 = vmatpush3.xpose.msk.msra.mxu1 %vm155_vm2, %v569_v39 }
 0x3a6   :  { %1981 = vmatprep.subr.mxu1 %v2210_v8 }
 0x3a8   :  { %1974 = vmatmul.mubr.msk.f32.vlgmr.msra.gmra.mrb[8].mxu1 %vm155_vm2, %v567_v43 }
 0x3a9   :  { %1983 = vmatprep.mubr.msk.f32.mxu1 %vm2211_vm1, %v2210_v8 }
 0x46f   :  { %v562_v49 = vpop.f32.mrb[2].mxu0 }
 0x470   :  { %v2363_v50 = vpop.f32.mrb[4].mxu1  ;;  %v1970_v51 = vpop.f32.mrb[3].mxu0  ;;  %v644_v60 = vmul.f32 0.35355338, %v562_v49 }
 0x471   :  { %v1960_v52 = vpop.f32.mrb[5].mxu1 }
 0x472   :  { %v646_v61 = vsel %vm2327_vm3, %v644_v60, -inf }
 0x473   :  { %v648_v62 = vsel %vm155_vm2, %v646_v61, -inf }
 0x474   :  { %v2365_v53 = vpop.f32.mrb[6].mxu1 }
 0x475   :  { %v1965_v54 = vpop.f32.mrb[7].mxu1 }
 0x476   :  { %v1319_v54 = vld [vmem:[#allocation7 + $0x10] sm:$0xff] }
 0x47b   :  { %v640_v55 = vpop.f32.mrb[8].mxu1 }
 0x47c   :  { %v645_v56 = vmul.f32 0.35355338, %v640_v55  ;;  %v1975_v57 = vpop.f32.mrb[9].mxu1 }
 0x47e   :  { %v647_v58 = vsel %vm2327_vm3, %v645_v56, -inf }
 0x47f   :  { %v651_v59 = vsel %vm155_vm2, %v647_v58, -inf }
 0x480   :  { %652 = vmax.xlane.f32.xlu1 %v651_v59 }
 0x491   :  { %746 = vrot.lane.b32.xlu1 %v2309_v9, %s2216_s30 }
 0x495   :  { %985 = vrot.lane.b32.xlu1 %v2311_v10, %s2217_s5 }
 0x499   :  { %1065 = vrot.lane.b32.xlu1 %v2309_v9, %s2218_s6 }
 0x49d   :  { %1063 = vrot.lane.b32.xlu1 %v2309_v9, %s2217_s5 }
 0x4c1   :  { %649 = vmax.xlane.f32.xlu1 %v648_v62 }
 0x50d   :  { %v653_v63 = vpop.xlane.xlu1 %652 }
 0x50e   :  { %v655_v0 = vsub.f32 %v647_v58, %v653_v63 }
 0x510   :  { %v658_v1 = vmul.f32 1.442695, %v655_v0 }
 0x511   :  { %v747_v2 = vpop.permute.xlu1 %746 }
 0x512   :  { %2087 = vpow2.f32 %v658_v1  ;;  %1982 = vmatpush3.msra.mxu1 %v747_v2 }
 0x513   :  { %1996 = vmatprep.subr.mxu1 %v2210_v8 }
 0x515   :  { %v986_v5 = vpop.permute.xlu1 %985 }
 0x519   :  { %v1066_v6 = vpop.permute.xlu1 %1065 }
 0x51c   :  { %v2088_v3 = vpop.eup %2087 }
 0x51d   :  { %v663_v4 = vsel %vm155_vm2, %v2088_v3, 0.0  ;;  %v1064_v7 = vpop.permute.xlu1 %1063 }
 0x51e   :  { %664 = vadd.xlane.f32.xlu0 %v663_v4 }
 0x534   :  { %987 = vrot.lane.b32.xlu0 %v2311_v10, %s2218_s6 }
 0x54e   :  { %v650_v11 = vpop.xlane.xlu1 %649 }
 0x54f   :  { %v654_v12 = vsub.f32 %v646_v61, %v650_v11 }
 0x551   :  { %v656_v13 = vmul.f32 1.442695, %v654_v12 }
 0x553   :  { %2089 = vpow2.f32 %v656_v13 }
 0x55d   :  { %v2090_v14 = vpop.eup %2089 }
 0x55e   :  { %v660_v15 = vsel %vm155_vm2, %v2090_v14, 0.0 }
 0x55f   :  { %661 = vadd.xlane.f32.xlu0 %v660_v15 }
 0x575   :  { %670 = vrot.lane.b32.xlu0 %v2311_v10, %s2216_s30 }
 0x579   :  { %1243 = vrot.lane.b32.xlu0 %v2309_v9, %s2219_s7 }
 0x57d   :  { %1405 = vrot.lane.b32.xlu0 %v2311_v10, %s2220_s8 }
 0x581   :  { %1483 = vrot.lane.b32.xlu0 %v2309_v9, %s2220_s8 }
 0x585   :  { %1403 = vrot.lane.b32.xlu0 %v2311_v10, %s2221_s9 }
 0x5ab   :  { %v665_v16 = vpop.xlane.xlu0 %664 }
 0x5ac   :  { %2091 = vrcp.f32 %v665_v16 }
 0x5af   :  { %v988_v20 = vpop.permute.xlu0 %987 }
 0x5b6   :  { %v2092_v18 = vpop.eup %2091 }
 0x5b7   :  { %v669_v19 = vmul.f32 %v2092_v18, %v2088_v3 }
 0x5b9   :  { %1984 = vmatmul.mubr.msk.f32.vlgmr.msra.gmra.mrb[10].mxu1 %vm155_vm2, %v669_v19 }
 0x5ba   :  { %1997 = vmatpush3.xpose.msk.msra.mxu1 %vm155_vm2, %v988_v20  ;;  %1998 = vmatprep.mubr.msk.f32.mxu1 %vm2211_vm1, %v2210_v8 }
 0x5bb   :  { %2001 = vmatprep.subr.mxu1 %v2210_v8 }
 0x5bd   :  { %1999 = vmatmul.mubr.msk.f32.vlgmr.msra.gmra.mrb[12].mxu1 %vm155_vm2, %v986_v5 }
 0x5be   :  { %2002 = vmatpush3.xpose.msk.msra.mxu1 %vm155_vm2, %v1066_v6  ;;  %2003 = vmatprep.mubr.msk.f32.mxu1 %vm2211_vm1, %v2210_v8 }
 0x5bf   :  { %2011 = vmatprep.subr.mxu1 %v2210_v8 }
 0x5c1   :  { %2004 = vmatmul.mubr.msk.f32.vlgmr.msra.gmra.mrb[14].mxu1 %vm155_vm2, %v1064_v7 }
 0x5c2   :  { %2013 = vmatprep.mubr.msk.f32.mxu1 %vm2211_vm1, %v2210_v8 }
 0x5ec   :  { %v662_v21 = vpop.xlane.xlu0 %661 }
 0x5ed   :  { %2093 = vrcp.f32 %v662_v21 }
 0x5f0   :  { %v671_v22 = vpop.permute.xlu0 %670 }
 0x5f1   :  { %1977 = vmatpush3.msra.mxu0 %v671_v22 }
 0x5f2   :  { %1986 = vmatprep.subr.mxu0 %v822_v26 }
 0x5f4   :  { %v1244_v23 = vpop.permute.xlu0 %1243 }
 0x5f5   :  { %2012 = vmatpush3.msra.mxu1 %v1244_v23 }
 0x5f6   :  { %2021 = vmatprep.subr.mxu1 %v2210_v8 }
 0x5f7   :  { %v2094_v24 = vpop.eup %2093 }
 0x5f8   :  { %v667_v25 = vmul.f32 %v2094_v24, %v2090_v14  ;;  %v1406_v56 = vpop.permute.xlu0 %1405 }
 0x5fa   :  { %1979 = vmatmul.mubr.msk.f32.vlgmr.msra.gmra.mrb[4].mxu0 %vm155_vm2, %v667_v25 }
 0x5fb   :  { %1987 = vmatpush3.msra.mxu0 %v822_v26 }
 0x5fc   :  { %1991 = vmatprep.subr.mxu0 %v487_v27  ;;  %v1484_v60 = vpop.permute.xlu0 %1483 }
 0x600   :  { %v1404_v62 = vpop.permute.xlu0 %1403 }
 0x68c   :  { %v818_v28 = vpop.f32.mrb[10].mxu1 }
 0x68d   :  { %v1985_v29 = vpop.f32.mrb[11].mxu1 }
 0x690   :  { %v1059_v30 = vpop.f32.mrb[12].mxu1 }
 0x691   :  { %v1141_v31 = vmul.f32 0.35355338, %v1059_v30  ;;  %v2000_v32 = vpop.f32.mrb[13].mxu1 }
 0x693   :  { %v1143_v33 = vsel %vm2327_vm3, %v1141_v31, -inf }
 0x694   :  { %v1137_v34 = vpop.f32.mrb[14].mxu1  ;;  %v1145_v35 = vsel %vm155_vm2, %v1143_v33, -inf }
 0x695   :  { %v1142_v36 = vmul.f32 0.35355338, %v1137_v34  ;;  %1146 = vmax.xlane.f32.xlu1 %v1145_v35  ;;  %v2005_v37 = vpop.f32.mrb[15].mxu1 }
 0x697   :  { %v1144_v38 = vsel %vm2327_vm3, %v1142_v36, -inf }
 0x698   :  { %v1148_v39 = vsel %vm155_vm2, %v1144_v38, -inf }
 0x699   :  { %1149 = vmax.xlane.f32.xlu1 %v1148_v39 }
 0x6cd   :  { %v742_v40 = vpop.f32.mrb[4].mxu0 }
 0x6ce   :  { %v1980_v41 = vpop.f32.mrb[5].mxu0  ;;  %1988 = vmatprep.mubr.msk.f32.mxu0 %vm155_vm2, %v742_v40 }
 0x6cf   :  { %1989 = vmatmul.mubr.msk.f32.vlgmr.msra.gmra.mrb[6].mxu0 %vm155_vm2, %v818_v28 }
 0x6d0   :  { %1993 = vmatprep.mubr.msk.f32.mxu0 %vm155_vm2, %v2363_v50  ;;  %1992 = vmatpush3.msra.mxu0 %v487_v27 }
 0x6d1   :  { %2006 = vmatprep.subr.mxu0 %v2210_v8 }
 0x6d7   :  { %1994 = vmatmul.mubr.msk.f32.vlgmr.msra.gmra.mrb[6].mxu0 %vm155_vm2, %v2365_v53 }
 0x6d8   :  { %2008 = vmatprep.mubr.msk.f32.mxu0 %vm2211_vm1, %v2210_v8 }
 0x722   :  { %v1147_v42 = vpop.xlane.xlu1 %1146 }
 0x723   :  { %v1151_v43 = vsub.f32 %v1143_v33, %v1147_v42 }
 0x725   :  { %v1153_v44 = vmul.f32 1.442695, %v1151_v43 }
 0x726   :  { %v1150_v45 = vpop.xlane.xlu1 %1149 }
 0x727   :  { %2095 = vpow2.f32 %v1153_v44  ;;  %v1152_v46 = vsub.f32 %v1144_v38, %v1150_v45 }
 0x729   :  { %v1155_v47 = vmul.f32 1.442695, %v1152_v46 }
 0x72b   :  { %2097 = vpow2.f32 %v1155_v47 }
 0x731   :  { %v2096_v48 = vpop.eup %2095 }
 0x732   :  { %v1157_v49 = vsel %vm155_vm2, %v2096_v48, 0.0 }
 0x733   :  { %1158 = vadd.xlane.f32.xlu1 %v1157_v49 }
 0x735   :  { %v2098_v50 = vpop.eup %2097 }
 0x736   :  { %v1160_v51 = vsel %vm155_vm2, %v2098_v50, 0.0 }
 0x737   :  { %1161 = vadd.xlane.f32.xlu1 %v1160_v51 }
 0x748   :  { %1167 = vrot.lane.b32.xlu1 %v2311_v10, %s2219_s7 }
 0x74c   :  { %1481 = vrot.lane.b32.xlu1 %v2309_v9, %s2221_s9 }
 0x7c0   :  { %v1159_v52 = vpop.xlane.xlu1 %1158 }
 0x7c1   :  { %2099 = vrcp.f32 %v1159_v52 }
 0x7c4   :  { %v1162_v53 = vpop.xlane.xlu1 %1161 }
 0x7c5   :  { %2101 = vrcp.f32 %v1162_v53 }
 0x7c8   :  { %v1168_v55 = vpop.permute.xlu1 %1167 }
 0x7c9   :  { %2007 = vmatpush3.msra.mxu0 %v1168_v55 }
 0x7ca   :  { %2016 = vmatprep.subr.mxu0 %v1319_v54 }
 0x7cb   :  { %v2100_v57 = vpop.eup %2099 }
 0x7cc   :  { %v1164_v58 = vmul.f32 %v2100_v57, %v2096_v48  ;;  %v1482_v3 = vpop.permute.xlu1 %1481 }
 0x7ce   :  { %2009 = vmatmul.mubr.msk.f32.vlgmr.msra.gmra.mrb[8].mxu0 %vm155_vm2, %v1164_v58 }
 0x7cf   :  { %v2102_v59 = vpop.eup %2101  ;;  %2017 = vmatpush3.msra.mxu0 %v1319_v54 }
 0x7d0   :  { %v1166_v61 = vmul.f32 %v2102_v59, %v2098_v50  ;;  %2026 = vmatprep.subr.mxu0 %v2210_v8 }
 0x7d2   :  { %2014 = vmatmul.mubr.msk.f32.vlgmr.msra.gmra.mrb[16].mxu1 %vm155_vm2, %v1166_v61 }
 0x7d3   :  { %2022 = vmatpush3.xpose.msk.msra.mxu1 %vm155_vm2, %v1406_v56  ;;  %2023 = vmatprep.mubr.msk.f32.mxu1 %vm2211_vm1, %v2210_v8 }
 0x7d4   :  { %2031 = vmatprep.subr.mxu1 %v2210_v8 }
 0x7d6   :  { %2024 = vmatmul.mubr.msk.f32.vlgmr.msra.gmra.mrb[18].mxu1 %vm155_vm2, %v1404_v62 }
 0x7d7   :  { %2033 = vmatprep.mubr.msk.f32.mxu1 %vm2211_vm1, %v2210_v8 }
 0x8a1   :  { %v1239_v63 = vpop.f32.mrb[8].mxu0 }
 0x8a2   :  { %v2010_v0 = vpop.f32.mrb[9].mxu0  ;;  %2018 = vmatprep.mubr.msk.f32.mxu0 %vm155_vm2, %v1239_v63 }
 0x8a5   :  { %v1315_v1 = vpop.f32.mrb[16].mxu1 }
 0x8a6   :  { %v2015_v2 = vpop.f32.mrb[17].mxu1  ;;  %2019 = vmatmul.mubr.msk.f32.vlgmr.msra.gmra.mrb[6].mxu0 %vm155_vm2, %v1315_v1 }
 0x8a7   :  { %2027 = vmatpush3.xpose.msk.msra.mxu0 %vm155_vm2, %v1484_v60  ;;  %2028 = vmatprep.mubr.msk.f32.mxu0 %vm2211_vm1, %v2210_v8 }
 0x8a8   :  { %2036 = vmatprep.subr.mxu0 %v2210_v8 }
 0x8a9   :  { %v1477_v4 = vpop.f32.mrb[18].mxu1 }
 0x8aa   :  { %v1559_v5 = vmul.f32 0.35355338, %v1477_v4  ;;  %v2025_v6 = vpop.f32.mrb[19].mxu1  ;;  %2029 = vmatmul.mubr.msk.f32.vlgmr.msra.gmra.mrb[10].mxu0 %vm155_vm2, %v1482_v3 }
 0x8ab   :  { %2038 = vmatprep.mubr.msk.f32.mxu0 %vm2211_vm1, %v2210_v8 }
 0x8ac   :  { %v1561_v7 = vsel %vm2327_vm3, %v1559_v5, -inf }
 0x8ad   :  { %v1563_v11 = vsel %vm155_vm2, %v1561_v7, -inf }
 0x8ae   :  { %1564 = vmax.xlane.f32.xlu0 %v1563_v11 }
 0x93b   :  { %v1565_v12 = vpop.xlane.xlu0 %1564 }
 0x93c   :  { %v1569_v13 = vsub.f32 %v1561_v7, %v1565_v12 }
 0x93e   :  { %v1571_v14 = vmul.f32 1.442695, %v1569_v13 }
 0x940   :  { %2103 = vpow2.f32 %v1571_v14 }
 0x94a   :  { %v2104_v15 = vpop.eup %2103 }
 0x94b   :  { %v1575_v16 = vsel %vm155_vm2, %v2104_v15, 0.0 }
 0x94c   :  { %1576 = vadd.xlane.f32.xlu0 %v1575_v16 }
 0x97d   :  { %v1555_v18 = vpop.f32.mrb[10].mxu0 }
 0x97e   :  { %v1560_v19 = vmul.f32 0.35355338, %v1555_v18  ;;  %v2030_v20 = vpop.f32.mrb[11].mxu0 }
 0x980   :  { %v1562_v8 = vsel %vm2327_vm3, %v1560_v19, -inf }
 0x981   :  { %v1566_v21 = vsel %vm155_vm2, %v1562_v8, -inf }
 0x982   :  { %1567 = vmax.xlane.f32.xlu1 %v1566_v21 }
 0x993   :  { %1585 = vrot.lane.b32.xlu1 %v2311_v10, %s2222_s10  ;;  %v1737_v10 = vld [vmem:[#allocation7 + $0x18] sm:$0xff] }
 0x9d9   :  { %v1577_v22 = vpop.xlane.xlu0 %1576 }
 0x9da   :  { %2105 = vrcp.f32 %v1577_v22 }
 0x9e4   :  { %v2106_v24 = vpop.eup %2105 }
 0x9e5   :  { %v1582_v27 = vmul.f32 %v2106_v24, %v2104_v15 }
 0xa0f   :  { %v1568_v23 = vpop.xlane.xlu1 %1567 }
 0xa10   :  { %v1570_v25 = vsub.f32 %v1562_v8, %v1568_v23 }
 0xa12   :  { %v1573_v26 = vmul.f32 1.442695, %v1570_v25 }
 0xa13   :  { %v1586_v28 = vpop.permute.xlu1 %1585 }
 0xa14   :  { %2107 = vpow2.f32 %v1573_v26  ;;  %2032 = vmatpush3.msra.mxu1 %v1586_v28 }
 0xa15   :  { %2034 = vmatmul.mubr.msk.f32.vlgmr.msra.gmra.mrb[20].mxu1 %vm155_vm2, %v1582_v27 }
 0xa1e   :  { %v2108_v17 = vpop.eup %2107 }
 0xa1f   :  { %v1578_v29 = vsel %vm155_vm2, %v2108_v17, 0.0 }
 0xa20   :  { %1579 = vadd.xlane.f32.xlu0 %v1578_v29 }
 0xa36   :  { %1661 = vrot.lane.b32.xlu0 %v2309_v9, %s2222_s10  ;;  %v1884_v9 = vld [vmem:[%s2482_s3] ss:$0 sm:$0xff] }
 0xaad   :  { %v1580_v30 = vpop.xlane.xlu0 %1579 }
 0xaae   :  { %2109 = vrcp.f32 %v1580_v30 }
 0xab1   :  { %v1662_v31 = vpop.permute.xlu0 %1661 }
 0xab2   :  { %2037 = vmatpush3.msra.mxu0 %v1662_v31 }
 0xab3   :  { %2041 = vmatprep.subr.mxu0 %v1737_v10 }
 0xab8   :  { %v2110_v32 = vpop.eup %2109 }
 0xab9   :  { %v1584_v33 = vmul.f32 %v2110_v32, %v2108_v17 }
 0xabb   :  { %2039 = vmatmul.mubr.msk.f32.vlgmr.msra.gmra.mrb[12].mxu0 %vm155_vm2, %v1584_v33 }
 0xabc   :  { %2042 = vmatpush3.msra.mxu0 %v1737_v10 }
 0xae8   :  { %v1657_v34 = vpop.f32.mrb[20].mxu1 }
 0xae9   :  { %v2035_v35 = vpop.f32.mrb[21].mxu1  ;;  %2043 = vmatprep.mubr.msk.f32.mxu0 %vm155_vm2, %v1657_v34 }
 0xb8e   :  { %v1733_v36 = vpop.f32.mrb[12].mxu0 }
 0xb8f   :  { %v2040_v37 = vpop.f32.mrb[13].mxu0  ;;  %2044 = vmatmul.mubr.msk.f32.vlgmr.msra.gmra.mrb[6].mxu0 %vm155_vm2, %v1733_v36 }
 0xc62   :  { %v2045_v38 = vpop.f32.mrb[6].mxu0 }
 0xc63   :  { %v1829_v39 = vadd.f32 %v2045_v38, %v1884_v9  ;;  %v1810_v40 = vpop.f32.mrb[7].mxu0 }
 0xc64   :  { %v1828_v41 = vadd.f32 %v1884_v9, %v1810_v40 }
 0xc65   :  { %1831 = vst.msk [vmem:[#allocation8 + $0x8] sm:$0xff] %vm65_vm0, %v1829_v39 }
 0xc66   :  { %1830 = vst.msk [vmem:[#allocation8] sm:$0xff] %vm65_vm0, %v1828_v41 }
 0xc67   :  { %2188 = shalt.err (!%p2185_p0)
}
 0xc68   :  { %s2189_s16 = scalar_lea.hbm %s2483_s4, 256 }
 0xc69   :  { %p2190_p1 = scmp.ne.s32.totalorder %s2483_s4, %s2189_s16  ;;  %p2193_p2 = scmp.lt.u32.totalorder %s2189_s16, %s2483_s4 }
 0xc6b   :  { %p2195_p3 = pnand %p2193_p2, %p2190_p1 }
 0xc6d   :  { %2198 = shalt.err (!%p2195_p3)
}
 0xc6e   :  { %1843 = dma.vmem_to_hbm [thread:$0]  %s1838_s13, 256, %s2483_s4, [#allocation4], %s2207_s27, %s2207_s27, %s2208_s28  }
 0xc6f   :  { %2203 = dma.done.wait [#allocation4], 256  }
 0xc70   :  { %2204 = vsyncadd [#allocation4], 4294967040 }
 0xc71   :  { %1847 = vsyncpa [#allocation3], 1 }
 0xc72   :  { %1848 = vsyncpa [#allocation6], 1 }
 0xc73   :  { %1849 = vsyncpa [#allocation4], 1 }

</bundles_post_ra>
